<compile_context>
chip_gen: v5e
topology: v5e:2x2
jax: 0.10.0
libtpu: 0.0.40
codegen_flags: <defaults>
</compile_context>

<pallas_src>
import jax
import jax.numpy as jnp
from jax import lax
from jax.experimental import pallas as pl
from jax.experimental.pallas import tpu as pltpu


def _stem_kernel(x_ref, w_ref, pb_ref, o_ref):
    # x_ref:  (K, TP)    bf16 patch features of one (batch, P-tile)
    # w_ref:  (Cout, K)  bf16 flattened conv weight (resident across grid)
    # pb_ref: (Cout, TP) f32 pos_embed + bias for this P-tile
    # o_ref:  (Cout, TP) output tile (lane-dense along TP)
    acc = jnp.dot(w_ref[...], x_ref[...], preferred_element_type=jnp.float32)
    o_ref[...] = (acc + pb_ref[...]).astype(o_ref.dtype)


def _choose_p_tile(P, max_tile=1024):
    """Largest multiple-of-128 divisor of P (<= max_tile); fall back to P."""
    if P <= max_tile or P % 128 != 0:
        return P
    t = max_tile - (max_tile % 128)
    while t >= 128:
        if P % t == 0:
            return t
        t -= 128
    return P


def custom_model_forward(x_nchw, conv_w, conv_b, pos_embed, *, patch=4,
                         compute_dtype=jnp.bfloat16, p_tile=None):
    """x_nchw: (N, C, H, W); conv_w: (Cout, C, patch, patch); conv_b: (Cout,);
    pos_embed: (1, Cout, H//patch, W//patch). Returns (N, Cout, H//patch, W//patch)."""
    N, C, H, W = x_nchw.shape
    Cout = conv_w.shape[0]
    assert H % patch == 0 and W % patch == 0, "H and W must be divisible by patch"
    Hp, Wp = H // patch, W // patch
    P = Hp * Wp
    K = C * patch * patch

    # ---- host glue: patchify to (N, K, P), K ordered (C, kh, kw), P ordered (h, w)
    xp = x_nchw.reshape(N, C, Hp, patch, Wp, patch)
    xp = jnp.transpose(xp, (0, 1, 3, 5, 2, 4)).reshape(N, K, P)
    xp = xp.astype(compute_dtype)

    # flattened conv weight: (Cout, C, ph, pw) -> (Cout, K)  (no transpose)
    w_flat = conv_w.reshape(Cout, K).astype(compute_dtype)

    # pos_embed (1, Cout, Hp, Wp) -> (Cout, P) is a pure reshape; fold bias in.
    pos_bias = (pos_embed.reshape(Cout, P)
                + conv_b.reshape(Cout, 1)).astype(jnp.float32)

    tp = _choose_p_tile(P) if p_tile is None else p_tile
    num_tp = P // tp

    out_flat = pl.pallas_call(
        _stem_kernel,
        out_shape=jax.ShapeDtypeStruct((N, Cout, P), x_nchw.dtype),
        grid_spec=pltpu.PrefetchScalarGridSpec(
            num_scalar_prefetch=0,
            grid=(N, num_tp),
            in_specs=[
                pl.BlockSpec((None, K, tp), lambda n, t: (n, 0, t)),
                pl.BlockSpec((Cout, K), lambda n, t: (0, 0)),
                pl.BlockSpec((Cout, tp), lambda n, t: (0, t)),
            ],
            out_specs=pl.BlockSpec((None, Cout, tp), lambda n, t: (n, 0, t)),
        ),
        compiler_params=pltpu.CompilerParams(
            dimension_semantics=("parallel", "parallel")),
    )(xp, w_flat, pos_bias)

    # (N, Cout, P) -> NCHW is a free reshape (no transpose).
    return out_flat.reshape(N, Cout, Hp, Wp)


def _reference_forward(x, conv_w, conv_b, pos_embed, *, patch=4,
                       compute_dtype=jnp.bfloat16):
    # Apply the same bf16 operand rounding as the kernel, accumulate in f32.
    xq = x.astype(compute_dtype).astype(jnp.float32)
    wq = conv_w.astype(compute_dtype).astype(jnp.float32)
    y = lax.conv_general_dilated(
        xq, wq, window_strides=(patch, patch), padding="VALID",
        dimension_numbers=("NCHW", "OIHW", "NCHW"),
        precision=lax.Precision.HIGHEST)
    return y + conv_b.reshape(1, -1, 1, 1) + pos_embed


if __name__ == "__main__":
    # Small shapes consistent with the module: batch=2, in_channels=4,
    # height=width=16, stem out_channels=32, downsample factor 2^(3-1)=4.
    N, C, H, W = 2, 4, 16, 16
    Cout, patch = 32, 4

    key = jax.random.PRNGKey(0)
    k_x, k_w, k_b, k_pos = jax.random.split(key, 4)

    x = jax.random.normal(k_x, (N, C, H, W), dtype=jnp.float32)

    # Kaiming-normal (fan_in, gain sqrt(2)) as in model_init(). Bias / pos_embed
    # are zero at init but trainable; use small nonzero values here to exercise
    # the full forward data path.
    fan_in = C * patch * patch
    conv_w = jax.random.normal(k_w, (Cout, C, patch, patch),
                               dtype=jnp.float32) * jnp.sqrt(2.0 / fan_in)
    conv_b = 0.1 * jax.random.normal(k_b, (Cout,), dtype=jnp.float32)
    pos_embed = 0.1 * jax.random.normal(
        k_pos, (1, Cout, H // patch, W // patch), dtype=jnp.float32)

    out = custom_model_forward(x, conv_w, conv_b, pos_embed, patch=patch)
    out = jax.block_until_ready(out)

    ref = _reference_forward(x, conv_w, conv_b, pos_embed, patch=patch)
    assert out.shape == (N, Cout, H // patch, W // patch)
    assert jnp.allclose(out, ref, atol=1e-3, rtol=1e-3), \
        float(jnp.max(jnp.abs(out - ref)))

    print("KERNEL_OK")
</pallas_src>

<mosaic_0001>
module attributes {stable_mosaic.version = 11 : i64} {
  func.func @_stem_kernel(%arg0: i32, %arg1: i32, %arg2: memref<1x64x16xbf16, #tpu.memory_space<vmem>>, %arg3: memref<32x64xbf16, #tpu.memory_space<vmem>>, %arg4: memref<32x16xf32, #tpu.memory_space<vmem>>, %arg5: memref<1x32x16xf32, #tpu.memory_space<vmem>>) attributes {dimension_semantics = [#tpu.dimension_semantics<parallel>, #tpu.dimension_semantics<parallel>], iteration_bounds = array<i64: 2, 1>, scalar_prefetch = 0 : i64, scratch_operands = 0 : i64, tpu.core_type = #tpu.core_type<tc>, window_params = [{transform_indices = @transform_0, window_bounds = array<i64: 1, 64, 16>}, {pipeline_mode = #tpu.pipeline_mode<synchronous>, transform_indices = @transform_1, window_bounds = array<i64: 32, 64>}, {transform_indices = @transform_2, window_bounds = array<i64: 32, 16>}, {transform_indices = @transform_3, window_bounds = array<i64: 1, 32, 16>}]} {
    %c0 = arith.constant 0 : index
    %c0_0 = arith.constant 0 : index
    %0 = vector.load %arg3[%c0, %c0_0] : memref<32x64xbf16, #tpu.memory_space<vmem>>, vector<32x64xbf16>
    %c0_1 = arith.constant 0 : index
    %c0_2 = arith.constant 0 : index
    %c0_3 = arith.constant 0 : index
    %1 = vector.load %arg2[%c0_1, %c0_2, %c0_3] : memref<1x64x16xbf16, #tpu.memory_space<vmem>>, vector<1x64x16xbf16>
    %2 = vector.shape_cast %1 : vector<1x64x16xbf16> to vector<64x16xbf16>
    %cst = arith.constant dense<0.000000e+00> : vector<32x16xf32>
    %3 = tpu.matmul %0, %2, %cst {dimension_numbers = #tpu.dot_dimension_numbers<[1], [0], [0], [1], [0, 0, 1, 1], [], []>} : vector<32x64xbf16>, vector<64x16xbf16>, vector<32x16xf32> -> vector<32x16xf32>
    %c0_4 = arith.constant 0 : index
    %c0_5 = arith.constant 0 : index
    %4 = vector.load %arg4[%c0_4, %c0_5] : memref<32x16xf32, #tpu.memory_space<vmem>>, vector<32x16xf32>
    %5 = arith.addf %3, %4 : vector<32x16xf32>
    %c0_6 = arith.constant 0 : index
    %c0_7 = arith.constant 0 : index
    %c0_8 = arith.constant 0 : index
    %6 = vector.load %arg5[%c0_6, %c0_7, %c0_8] : memref<1x32x16xf32, #tpu.memory_space<vmem>>, vector<1x32x16xf32>
    %7 = vector.shape_cast %6 : vector<1x32x16xf32> to vector<32x16xf32>
    %8 = vector.shape_cast %5 : vector<32x16xf32> to vector<1x32x16xf32>
    tpu.vector_store %arg5[%c0_6, %c0_7, %c0_8], %8 {strides = array<i32>} : memref<1x32x16xf32, #tpu.memory_space<vmem>>, vector<1x32x16xf32>,
    return
  }
  func.func @transform_0(%arg0: i32, %arg1: i32) -> (i32, i32, i32) {
    %c0_i32 = arith.constant 0 : i32
    %c0_i32_0 = arith.constant 0 : i32
    return %arg0, %c0_i32, %arg1 : i32, i32, i32
  }
  func.func @transform_1(%arg0: i32, %arg1: i32) -> (i32, i32) {
    %c0_i32 = arith.constant 0 : i32
    %c0_i32_0 = arith.constant 0 : i32
    %c0_i32_1 = arith.constant 0 : i32
    return %c0_i32, %c0_i32_0 : i32, i32
  }
  func.func @transform_2(%arg0: i32, %arg1: i32) -> (i32, i32) {
    %c0_i32 = arith.constant 0 : i32
    %c0_i32_0 = arith.constant 0 : i32
    return %c0_i32, %arg1 : i32, i32
  }
  func.func @transform_3(%arg0: i32, %arg1: i32) -> (i32, i32, i32) {
    %c0_i32 = arith.constant 0 : i32
    %c0_i32_0 = arith.constant 0 : i32
    return %arg0, %c0_i32, %arg1 : i32, i32, i32
  }
}

</mosaic_0001>

<bundles_post_ra>
// kernel: tpu_custom_call.1
= control target key start
LH: loop header
LB: loop body
LE: loop exit
PB: predicated region body
PF: predicated region fallthrough
CT: control target
= control target key end

     0   :  { %s518_s12 = smov 0   ;;  %s520_s13 = smov 0   ;;  %s569_s0 = inlined_call_operand.vmem [shape: bf16[2,64,16], index: 0, kind: input, shape index: {}]   ;;  %s570_s1 = inlined_call_operand.vmem [shape: bf16[32,64], index: 1, kind: input, shape index: {}]   ;;  %s571_s2 = inlined_call_operand.vmem [shape: f32[32,16], index: 2, kind: input, shape index: {}]   ;;  %s572_s3 = inlined_call_operand.vmem [shape: f32[2,32,16], index: 3, kind: output, shape index: {}]  }
   0x1   :  { %s522_s14 = smov 0  }
   0x2 LB: > { %s25_s15 = sadd.s32 1, %s492_s13  ;;  %p405_p0 = scmp.ge.s32.totalorder %s496_s14, 1  ;;  %s496_s14 = sphi %s522_s14, %s13_s14   ;;  %s492_s13 = sphi %s520_s13, %s574_s13   ;;  %s488_s12 = sphi %s518_s12, %s573_s12  }
   0x3   : > { %p27_p1 = scmp.ge.s32.totalorder %s25_s15, 2  ;;  %p165_p2 = scmp.lt.s32.totalorder %s496_s14, 3 }
   0x5   : > { %s576_s15 = smov (%p27_p1, %s25_s15), 0  ;;  %p166_p3 = pnand %p405_p0, %p165_p2 }
   0x6   : > { %p199_p4 = scmp.lt.s32.totalorder (!%p166_p3), %s488_s12, 1 }
   0x7   : > { %169 = sbr.rel (%p166_p3) target bundleno = 169 (0xa9), region = 32 }
   0xc   : > { %s578_s12 = smov (!%p199_p4, %s488_s12), 1  ;;  %v440_v4 = vld [vmem:[%s570_s1] sm:$0xff]  ;;  %v441_v5 = vld [vmem:[%s570_s1 + $0x8] sm:$0xff]  ;;  %vm270_vm0 = vcmask 523264   ;;  %v234_v7 = vld [vmem:[%s571_s2 + $0x10] sm:$0xff]  ;;  %vm296_vm1 = vcmask 130048  }
   0xd   : > { %s438_s16 = sshll.u32 %s578_s12, 5  ;;  %v232_v6 = vld [vmem:[%s571_s2] sm:$0xff]  ;;  %v233_v12 = vld [vmem:[%s571_s2 + $0x8] sm:$0xff]  ;;  %v235_v13 = vld [vmem:[%s571_s2 + $0x18] sm:$0xff] }
   0xe   : > { %s206_s19 = scalar_lea.vmem %s569_s0, %s438_s16  ;;  %s218_s30 = scalar_lea.vmem %s572_s3, %s438_s16 }
   0xf   : > { %v445_v0 = vld [vmem:[%s206_s19 + $0x18] sm:$0xff]  ;;  %v444_v1 = vld [vmem:[%s206_s19 + $0x10] sm:$0xff]  ;;  %v443_v2 = vld [vmem:[%s206_s19 + $0x8] sm:$0xff] }
  0x10   : > { %281 = vmatpush.bf16.msra.mxu0 %v445_v0  ;;  %446 = vmatpush.bf16.msra.mxu1 %v445_v0  ;;  %v442_v3 = vld [vmem:[%s206_s19] sm:$0xff] }
  0x14   : > { %282 = vmatpush.bf16.msra.mxu0 %v444_v1  ;;  %447 = vmatpush.bf16.msra.mxu1 %v444_v1 }
  0x18   : > { %283 = vmatpush.bf16.msra.mxu0 %v443_v2  ;;  %448 = vmatpush.bf16.msra.mxu1 %v443_v2 }
  0x1c   : > { %284 = vmatpush.bf16.msra.mxu0 %v442_v3  ;;  %449 = vmatpush.bf16.msra.mxu1 %v442_v3 }
  0x1f   : > { %434 = vmatmul.msk.bf16.vlgmr.msra.gmra.mxu0 %vm270_vm0, %v440_v4  ;;  %435 = vmatmul.msk.bf16.vlgmr.msra.gmra.mxu1 %vm270_vm0, %v441_v5 }
  0x9c   : > { %v286_v8 = vpop.f32.mrf.mxu0  ;;  %v291_v9 = vpop.f32.mrf.mxu1 }
  0x9d   : > { %v287_v10 = vadd.f32 %v286_v8, %v232_v6  ;;  %v292_v11 = vadd.f32 %v291_v9, %v234_v7 }
  0x9f   : > { %297 = vst.msk [vmem:[%s218_s30] sm:$0xff] %vm296_vm1, %v287_v10 }
  0xa0   : > { %299 = vst.msk [vmem:[%s218_s30 + $0x10] sm:$0xff] %vm296_vm1, %v292_v11 }
  0xa4   : > { %v288_v14 = vpop.f32.mrf.mxu0  ;;  %v293_v15 = vpop.f32.mrf.mxu1 }
  0xa5   : > { %v289_v16 = vadd.f32 %v288_v14, %v233_v12  ;;  %v294_v17 = vadd.f32 %v293_v15, %v235_v13 }
  0xa7   : > { %298 = vst.msk [vmem:[%s218_s30 + $0x8] sm:$0xff] %vm296_vm1, %v289_v16 }
  0xa8   : > { %300 = vst.msk [vmem:[%s218_s30 + $0x18] sm:$0xff] %vm296_vm1, %v294_v17 }
  0xa9 PF: > { %s13_s14 = sadd.s32 1, %s496_s14   ;;  %s573_s12 = smov %s492_s13 }
  0xaa   : > { %p10_p5 = scmp.ge.s32.totalorder %s13_s14, 4   ;;  %s574_s13 = smov %s576_s15 }
  0xac   :  { %12 = sbr.rel (!%p10_p5) target bundleno = 2 (0x2), region = 65 }

</bundles_post_ra>
